<compile_context>
chip_gen: v5e
topology: v5e:2x2
jax: 0.10.0
libtpu: 0.0.40
codegen_flags: <defaults>
</compile_context>

<pallas_src>
import functools

import jax
import jax.numpy as jnp
import numpy as np
from jax.experimental import pallas as pl
from jax.experimental.pallas import tpu as pltpu


def _textcnn_kernel(window_sizes, n_channel, seq_len,
                    ids_ref, combined_ref, fc_w_ref, fc_b_ref, out_ref):
    M = ids_ref.shape[0]            # TB * L (flat token rows for this block)
    L = seq_len
    TB = M // L
    V = combined_ref.shape[0]
    C = n_channel
    NP = out_ref.shape[1]

    # ---- in-kernel embedding gather FUSED with the conv weights: one bf16 MXU push ----
    # TODO(synk): out-of-range token ids silently map to an all-zero row here
    #             (torch nn.Embedding would raise); for large vocabularies use a
    #             scalar-prefetch / DMA row gather instead of a one-hot matmul.
    ids = ids_ref[...]                                               # (M, 1) int32
    iota_v = jax.lax.broadcasted_iota(jnp.int32, (M, V), 1)
    onehot = (ids == iota_v).astype(jnp.bfloat16)                    # (M, V), exact 0/1
    y = jnp.dot(onehot, combined_ref[...],
                preferred_element_type=jnp.float32)                  # (M, TOT) f32
    y = y.reshape(TB, L, y.shape[-1])

    fc_w = fc_w_ref[...]                                             # (K*C, NP) bf16
    logits = jnp.zeros((TB, NP), jnp.float32) + fc_b_ref[...]        # conv bias folded in

    col = 0
    for wi, w in enumerate(window_sizes):
        Lout = L - w + 1
        # shift-add the per-offset contributions (VPU work): (TB, Lout, C)
        acc = y[:, 0:Lout, col:col + C]
        for dw in range(1, w):
            acc = acc + y[:, dw:dw + Lout, col + dw * C: col + (dw + 1) * C]
        col += w * C
        # Reference module applies NO activation before the pool; the per-channel
        # bias commutes with max and was folded into fc_b in the wrapper.
        pooled = jnp.max(acc, axis=1)                                # (TB, C) f32
        # FC on the "concatenated" features == sum of per-window partial matmuls.
        logits = logits + jnp.dot(pooled.astype(jnp.bfloat16),
                                  fc_w[wi * C:(wi + 1) * C, :],
                                  preferred_element_type=jnp.float32)

    # TODO(synk): nn.Dropout is identity at inference; training-mode dropout omitted.
    out_ref[...] = logits.astype(out_ref.dtype)


def textcnn_forward(x_ids, emb_table, conv_ws, conv_bs, fc_w, fc_b,
                    window_sizes, n_channel, n_class, block_b=64):
    B, L = x_ids.shape
    V, E = emb_table.shape
    K = len(window_sizes)
    C = n_channel

    # ---- batch tile selection ----
    TB = max(8, (block_b // 8) * 8)          # sublane-aligned batch tile
    TB = min(TB, pl.cdiv(B, 8) * 8)          # don't over-pad tiny batches
    if pl.cdiv(B, TB) < 2 and B > 8:         # keep >= 2 grid steps when batch allows
        TB = max(8, pl.cdiv(pl.cdiv(B, 2), 8) * 8)   # (v7x dual-TC sharding)
    B_pad = pl.cdiv(B, TB) * TB
    NP = pl.cdiv(n_class, 128) * 128         # lane-dense (unmasked-store) output width
    TOT = sum(window_sizes) * C

    # ids flattened to (B_pad*L, 1); pad rows use id 0 (valid row, results sliced off).
    ids_flat = jnp.zeros((B_pad * L, 1), jnp.int32).at[:B * L, 0].set(
        x_ids.astype(jnp.int32).reshape(B * L))

    # Fuse conv weights across (window, offset): per window (w, E, C) -> (E, w*C).
    wfused = jnp.concatenate(
        [jnp.transpose(cw, (1, 0, 2)).reshape(E, cw.shape[0] * C) for cw in conv_ws],
        axis=1).astype(jnp.float32)                                    # (E, TOT)
    # Fold the embedding table into the fused conv weight (one-hot gather is linear).
    combined = (emb_table.astype(jnp.float32) @ wfused).astype(jnp.bfloat16)  # (V, TOT)

    # Fold the conv biases into the FC bias (exact: bias commutes with max, FC linear).
    conv_b_flat = jnp.concatenate([cb.reshape(1, C) for cb in conv_bs], axis=1)  # (1, K*C)
    fc_b_eff = fc_b.reshape(1, n_class) + conv_b_flat.astype(jnp.float32) @ fc_w

    fc_w_pad = jnp.zeros((K * C, NP), jnp.float32).at[:, :n_class].set(
        fc_w).astype(jnp.bfloat16)
    fc_b_pad = jnp.zeros((1, NP), jnp.float32).at[:, :n_class].set(fc_b_eff)

    kernel = functools.partial(_textcnn_kernel, tuple(window_sizes), C, L)
    out = pl.pallas_call(
        kernel,
        out_shape=jax.ShapeDtypeStruct((B_pad, NP), jnp.float32),
        grid=(B_pad // TB,),
        in_specs=[
            pl.BlockSpec((TB * L, 1), lambda b: (b, 0)),     # flat token ids per block
            pl.BlockSpec((V, TOT), lambda b: (0, 0)),        # emb@conv fused weight (resident)
            pl.BlockSpec((K * C, NP), lambda b: (0, 0)),     # FC weight (lane padded, bf16)
            pl.BlockSpec((1, NP), lambda b: (0, 0)),         # FC (+folded conv) bias
        ],
        out_specs=pl.BlockSpec((TB, NP), lambda b: (b, 0)),
        compiler_params=pltpu.CompilerParams(
            dimension_semantics=("parallel",)),
    )(ids_flat, combined, fc_w_pad, fc_b_pad)
    return out[:B, :n_class]


def _textcnn_reference(x_ids, emb_table, conv_ws, conv_bs, fc_w, fc_b,
                       window_sizes, n_channel):
    """Pure-JAX f32 reference matching the PyTorch forward (no ReLU in the module)."""
    emb = jnp.take(emb_table, x_ids, axis=0)                           # (B, L, E)
    B, L, _ = emb.shape
    feats = []
    for wi, w in enumerate(window_sizes):
        Lout = L - w + 1
        acc = jnp.zeros((B, Lout, n_channel), jnp.float32)
        for dw in range(w):
            acc = acc + jnp.einsum('ble,ec->blc', emb[:, dw:dw + Lout, :],
                                   conv_ws[wi][dw])
        acc = acc + conv_bs[wi].reshape(1, 1, n_channel)
        feats.append(jnp.max(acc, axis=1))
    feats = jnp.concatenate(feats, axis=1)                             # (B, K*C)
    return feats @ fc_w + fc_b.reshape(1, -1)


if __name__ == "__main__":
    # Small, module-consistent shapes.
    n_vocab = 50
    n_class = 5
    n_channel = 8
    embedding_size = 32
    window_sizes = [2, 3, 4]
    batch = 12          # exercises batch padding and a 2-step grid
    seq_len = 16

    key = jax.random.PRNGKey(0)
    k_emb, k_x, k_fc_w, k_fc_b, *k_convs = jax.random.split(
        key, 4 + 2 * len(window_sizes))

    # Deterministic synthetic parameters (shapes mirror nn.Embedding / Conv2d / Linear).
    emb_table = jax.random.normal(k_emb, (n_vocab, embedding_size),
                                  jnp.float32) * 0.1
    conv_ws = []
    conv_bs = []
    for i, w in enumerate(window_sizes):
        kw = k_convs[2 * i]
        kb = k_convs[2 * i + 1]
        # torch Conv2d weight is (C, 1, w, E); stored here as (w, E, C).
        conv_ws.append(jax.random.normal(
            kw, (w, embedding_size, n_channel), jnp.float32) * 0.1)
        conv_bs.append(jax.random.normal(
            kb, (1, n_channel), jnp.float32) * 0.1)
    # torch Linear weight is (n_class, K*C); stored here as its transpose (K*C, n_class).
    fc_w = jax.random.normal(
        k_fc_w, (len(window_sizes) * n_channel, n_class), jnp.float32) * 0.1
    fc_b = jax.random.normal(k_fc_b, (1, n_class), jnp.float32) * 0.1

    x_ids = jax.random.randint(k_x, (batch, seq_len), 0, n_vocab, jnp.int32)

    logits = textcnn_forward(x_ids, emb_table, conv_ws, conv_bs, fc_w, fc_b,
                             window_sizes, n_channel, n_class)
    jax.block_until_ready(logits)
    assert logits.shape == (batch, n_class)

    ref = _textcnn_reference(x_ids, emb_table, conv_ws, conv_bs, fc_w, fc_b,
                             window_sizes, n_channel)
    max_err = float(np.abs(np.asarray(logits) - np.asarray(ref)).max())
    # bf16 MXU operands are intentional; error stays well inside 1e-2 tolerance.
    assert np.allclose(np.asarray(logits), np.asarray(ref),
                       rtol=1e-2, atol=1e-2), f"max abs err {max_err}"
    print("KERNEL_OK")
</pallas_src>

<mosaic_0001>
module attributes {stable_mosaic.version = 11 : i64} {
  func.func @_textcnn_kernel(%arg0: i32, %arg1: memref<128x1xi32, #tpu.memory_space<vmem>>, %arg2: memref<50x72xbf16, #tpu.memory_space<vmem>>, %arg3: memref<24x128xbf16, #tpu.memory_space<vmem>>, %arg4: memref<1x128xf32, #tpu.memory_space<vmem>>, %arg5: memref<8x128xf32, #tpu.memory_space<vmem>>) attributes {dimension_semantics = [#tpu.dimension_semantics<parallel>], iteration_bounds = array<i64: 2>, scalar_prefetch = 0 : i64, scratch_operands = 0 : i64, tpu.core_type = #tpu.core_type<tc>, window_params = [{transform_indices = @transform_0, window_bounds = array<i64: 128, 1>}, {pipeline_mode = #tpu.pipeline_mode<synchronous>, transform_indices = @transform_1, window_bounds = array<i64: 50, 72>}, {pipeline_mode = #tpu.pipeline_mode<synchronous>, transform_indices = @transform_2, window_bounds = array<i64: 24, 128>}, {pipeline_mode = #tpu.pipeline_mode<synchronous>, transform_indices = @transform_3, window_bounds = array<i64: 1, 128>}, {transform_indices = @transform_4, window_bounds = array<i64: 8, 128>}]} {
    %c0 = arith.constant 0 : index
    %c0_0 = arith.constant 0 : index
    %0 = vector.load %arg1[%c0, %c0_0] : memref<128x1xi32, #tpu.memory_space<vmem>>, vector<128x1xi32>
    %1 = tpu.iota {dimensions = array<i32: 1>} : vector<128x50xi32>
    %2 = vector.broadcast %0 : vector<128x1xi32> to vector<128x50xi32>
    %3 = arith.cmpi eq, %2, %1 : vector<128x50xi32>
    %4 = arith.extui %3 : vector<128x50xi1> to vector<128x50xi32>
    %5 = arith.sitofp %4 : vector<128x50xi32> to vector<128x50xf32>
    %6 = arith.truncf %5 : vector<128x50xf32> to vector<128x50xbf16>
    %c0_1 = arith.constant 0 : index
    %c0_2 = arith.constant 0 : index
    %7 = vector.load %arg2[%c0_1, %c0_2] : memref<50x72xbf16, #tpu.memory_space<vmem>>, vector<50x72xbf16>
    %cst = arith.constant dense<0.000000e+00> : vector<128x72xf32>
    %8 = tpu.matmul %6, %7, %cst {dimension_numbers = #tpu.dot_dimension_numbers<[1], [0], [0], [1], [0, 0, 1, 1], [], []>} : vector<128x50xbf16>, vector<50x72xbf16>, vector<128x72xf32> -> vector<128x72xf32>
    %9 = vector.shape_cast %8 : vector<128x72xf32> to vector<8x16x72xf32>
    %c0_3 = arith.constant 0 : index
    %c0_4 = arith.constant 0 : index
    %10 = vector.load %arg3[%c0_3, %c0_4] : memref<24x128xbf16, #tpu.memory_space<vmem>>, vector<24x128xbf16>
    %cst_5 = arith.constant 0.000000e+00 : f32
    %11 = vector.broadcast %cst_5 : f32 to vector<8x128xf32>
    %c0_6 = arith.constant 0 : index
    %c0_7 = arith.constant 0 : index
    %12 = vector.load %arg4[%c0_6, %c0_7] : memref<1x128xf32, #tpu.memory_space<vmem>>, vector<1x128xf32>
    %13 = vector.broadcast %12 : vector<1x128xf32> to vector<8x128xf32>
    %14 = arith.addf %11, %13 : vector<8x128xf32>
    %15 = vector.extract_strided_slice %9 {offsets = [0, 0, 0], sizes = [8, 15, 8], strides = [1, 1, 1]} : vector<8x16x72xf32> to vector<8x15x8xf32>
    %16 = vector.extract_strided_slice %9 {offsets = [0, 1, 8], sizes = [8, 15, 8], strides = [1, 1, 1]} : vector<8x16x72xf32> to vector<8x15x8xf32>
    %17 = arith.addf %15, %16 : vector<8x15x8xf32>
    %cst_8 = arith.constant dense<0xFF800000> : vector<8x8xf32>
    %18 = vector.multi_reduction <maximumf>, %17, %cst_8 [1] : vector<8x15x8xf32> to vector<8x8xf32>
    %19 = arith.truncf %18 : vector<8x8xf32> to vector<8x8xbf16>
    %20 = vector.extract_strided_slice %10 {offsets = [0, 0], sizes = [8, 128], strides = [1, 1]} : vector<24x128xbf16> to vector<8x128xbf16>
    %cst_9 = arith.constant dense<0.000000e+00> : vector<8x128xf32>
    %21 = tpu.matmul %19, %20, %cst_9 {dimension_numbers = #tpu.dot_dimension_numbers<[1], [0], [0], [1], [0, 0, 1, 1], [], []>} : vector<8x8xbf16>, vector<8x128xbf16>, vector<8x128xf32> -> vector<8x128xf32>
    %22 = arith.addf %14, %21 : vector<8x128xf32>
    %23 = vector.extract_strided_slice %9 {offsets = [0, 0, 16], sizes = [8, 14, 8], strides = [1, 1, 1]} : vector<8x16x72xf32> to vector<8x14x8xf32>
    %24 = vector.extract_strided_slice %9 {offsets = [0, 1, 24], sizes = [8, 14, 8], strides = [1, 1, 1]} : vector<8x16x72xf32> to vector<8x14x8xf32>
    %25 = arith.addf %23, %24 : vector<8x14x8xf32>
    %26 = vector.extract_strided_slice %9 {offsets = [0, 2, 32], sizes = [8, 14, 8], strides = [1, 1, 1]} : vector<8x16x72xf32> to vector<8x14x8xf32>
    %27 = arith.addf %25, %26 : vector<8x14x8xf32>
    %cst_10 = arith.constant dense<0xFF800000> : vector<8x8xf32>
    %28 = vector.multi_reduction <maximumf>, %27, %cst_10 [1] : vector<8x14x8xf32> to vector<8x8xf32>
    %29 = arith.truncf %28 : vector<8x8xf32> to vector<8x8xbf16>
    %30 = vector.extract_strided_slice %10 {offsets = [8, 0], sizes = [8, 128], strides = [1, 1]} : vector<24x128xbf16> to vector<8x128xbf16>
    %cst_11 = arith.constant dense<0.000000e+00> : vector<8x128xf32>
    %31 = tpu.matmul %29, %30, %cst_11 {dimension_numbers = #tpu.dot_dimension_numbers<[1], [0], [0], [1], [0, 0, 1, 1], [], []>} : vector<8x8xbf16>, vector<8x128xbf16>, vector<8x128xf32> -> vector<8x128xf32>
    %32 = arith.addf %22, %31 : vector<8x128xf32>
    %33 = vector.extract_strided_slice %9 {offsets = [0, 0, 40], sizes = [8, 13, 8], strides = [1, 1, 1]} : vector<8x16x72xf32> to vector<8x13x8xf32>
    %34 = vector.extract_strided_slice %9 {offsets = [0, 1, 48], sizes = [8, 13, 8], strides = [1, 1, 1]} : vector<8x16x72xf32> to vector<8x13x8xf32>
    %35 = arith.addf %33, %34 : vector<8x13x8xf32>
    %36 = vector.extract_strided_slice %9 {offsets = [0, 2, 56], sizes = [8, 13, 8], strides = [1, 1, 1]} : vector<8x16x72xf32> to vector<8x13x8xf32>
    %37 = arith.addf %35, %36 : vector<8x13x8xf32>
    %38 = vector.extract_strided_slice %9 {offsets = [0, 3, 64], sizes = [8, 13, 8], strides = [1, 1, 1]} : vector<8x16x72xf32> to vector<8x13x8xf32>
    %39 = arith.addf %37, %38 : vector<8x13x8xf32>
    %cst_12 = arith.constant dense<0xFF800000> : vector<8x8xf32>
    %40 = vector.multi_reduction <maximumf>, %39, %cst_12 [1] : vector<8x13x8xf32> to vector<8x8xf32>
    %41 = arith.truncf %40 : vector<8x8xf32> to vector<8x8xbf16>
    %42 = vector.extract_strided_slice %10 {offsets = [16, 0], sizes = [8, 128], strides = [1, 1]} : vector<24x128xbf16> to vector<8x128xbf16>
    %cst_13 = arith.constant dense<0.000000e+00> : vector<8x128xf32>
    %43 = tpu.matmul %41, %42, %cst_13 {dimension_numbers = #tpu.dot_dimension_numbers<[1], [0], [0], [1], [0, 0, 1, 1], [], []>} : vector<8x8xbf16>, vector<8x128xbf16>, vector<8x128xf32> -> vector<8x128xf32>
    %44 = arith.addf %32, %43 : vector<8x128xf32>
    %c0_14 = arith.constant 0 : index
    %c0_15 = arith.constant 0 : index
    %45 = vector.load %arg5[%c0_14, %c0_15] : memref<8x128xf32, #tpu.memory_space<vmem>>, vector<8x128xf32>
    tpu.vector_store %arg5[%c0_14, %c0_15], %44 {strides = array<i32>} : memref<8x128xf32, #tpu.memory_space<vmem>>, vector<8x128xf32>,
    return
  }
  func.func @transform_0(%arg0: i32) -> (i32, i32) {
    %c0_i32 = arith.constant 0 : i32
    %c0_i32_0 = arith.constant 0 : i32
    return %arg0, %c0_i32 : i32, i32
  }
  func.func @transform_1(%arg0: i32) -> (i32, i32) {
    %c0_i32 = arith.constant 0 : i32
    %c0_i32_0 = arith.constant 0 : i32
    %c0_i32_1 = arith.constant 0 : i32
    return %c0_i32, %c0_i32_0 : i32, i32
  }
  func.func @transform_2(%arg0: i32) -> (i32, i32) {
    %c0_i32 = arith.constant 0 : i32
    %c0_i32_0 = arith.constant 0 : i32
    %c0_i32_1 = arith.constant 0 : i32
    return %c0_i32, %c0_i32_0 : i32, i32
  }
  func.func @transform_3(%arg0: i32) -> (i32, i32) {
    %c0_i32 = arith.constant 0 : i32
    %c0_i32_0 = arith.constant 0 : i32
    %c0_i32_1 = arith.constant 0 : i32
    return %c0_i32, %c0_i32_0 : i32, i32
  }
  func.func @transform_4(%arg0: i32) -> (i32, i32) {
    %c0_i32 = arith.constant 0 : i32
    %c0_i32_0 = arith.constant 0 : i32
    return %arg0, %c0_i32 : i32, i32
  }
}

</mosaic_0001>

<bundles_post_ra>
// kernel: tpu_custom_call.1
= control target key start
LH: loop header
LB: loop body
LE: loop exit
PB: predicated region body
PF: predicated region fallthrough
CT: control target
= control target key end

     0   :  { %9 = vsyncpa [#allocation3], 0  ;;  %s1878_s0 = inlined_call_operand.vmem [shape: s32[256,1], index: 0, kind: input, shape index: {}]   ;;  %s1879_s1 = inlined_call_operand.vmem [shape: bf16[50,72], index: 1, kind: input, shape index: {}]   ;;  %s1880_s2 = inlined_call_operand.vmem [shape: bf16[24,128], index: 2, kind: input, shape index: {}]   ;;  %s1881_s3 = inlined_call_operand.vmem [shape: f32[1,128], index: 3, kind: input, shape index: {}]   ;;  %s1882_s4 = inlined_call_operand.hbm [shape: f32[16,128], index: 4, kind: output, shape index: {}]  }
   0x1   :  { %11 = vsyncpa [#allocation3 + $0x1], 0  ;;  %s1393_s15 = smov 0   ;;  %s1395_s16 = smov 0  }
   0x2   :  { %s1397_s17 = smov 0   ;;  %s1399_s18 = smov 0  }
   0x3 LB: > { %s1414_s19 = sadd.s32 4294967295, %s1360_s18   ;;  %s1184_s20 = sadd.s32 4294967294, %s1360_s18   ;;  %s1360_s18 = sphi %s1399_s18, %s1888_s18   ;;  %s1356_s17 = sphi %s1397_s17, %s1887_s17   ;;  %s1352_s16 = sphi %s1395_s16, %s1886_s16   ;;  %s1348_s15 = sphi %s1393_s15, %s1885_s15  }
   0x4   : > { %s1418_s21 = sadd.s32 1, %s1360_s18   ;;  %s113_s22 = sadd.s32 1, %s1356_s17 }
   0x5   : > { %s110_s23 = ssub.s32 %s1360_s18, %s1418_s21  ;;  %p123_p0 = scmp.ne.s32.totalorder %s1356_s17, %s1352_s16 }
   0x6   : > { %p111_p1 = scmp.eq.s32.totalorder %s110_s23, 0  ;;  %p124_p2 = scmp.eq.s32.totalorder %s1414_s19, 1 }
   0x7   : > { %p129_p3 = scmp.ne.s32.totalorder %s1352_s16, %s1348_s15  ;;  %p130_p4 = scmp.eq.s32.totalorder %s1184_s20, 1 }
   0x8   : > { %s1429_s24 = scalar_select %p111_p1, %s1356_s17, %s113_s22  }
   0x9   : > { %p1431_p5 = por %p124_p2, %p123_p0  ;;  %p1435_p6 = por %p130_p4, %p129_p3 }
   0xa   : > { %p1187_p7 = scmp.ge.s32.totalorder %s1360_s18, 1  ;;  %p166_p8 = scmp.lt.s32.totalorder %s1360_s18, 3 }
   0xc   : > { %p167_p9 = pnand %p1187_p7, %p166_p8 }
   0xd   : > { %s1189_s27 = sshll.u32 (!%p167_p9), %s1414_s19, 4  ;;  %s1364_s14 = smov (!%p167_p9), 112  }
   0xe   : > { %170 = sbr.rel (%p167_p9) target bundleno = 806 (0x326), region = 36  ;;  %p193_p10 = scmp.lt.s32.totalorder (!%p167_p9), %s1189_s27, 31 }
   0xf   : > { %s1365_s20 = smov (!%p167_p9), 120   ;;  %s1366_s22 = smov (!%p167_p9), 104  }
  0x10   : > { %s1367_s30 = smov (!%p167_p9), 88   ;;  %s189_s7 = sand.u32 (!%p167_p9), 1, %s1352_s16  }
  0x11   : > { %s1188_s8 = sshll.u32 (!%p167_p9), %s189_s7, 3  ;;  %s1231_s9 = sshll.u32 (!%p167_p9), %s1414_s19, 3 }
  0x12   : > { %s1110_s19 = scalar_lea.sflag (!%p167_p9), [#allocation3], %s189_s7 }
  0x13   : > { %v1362_v0 = vmov 0   ;;  %s1890_s27 = smov (!%p193_p10, %s1189_s27), 31  ;;  %v327_v17 = vld [vmem:[%s1879_s1 + $0x18] sm:$0x1]  ;;  %vm374_vm0 = vcmask 1040384   ;;  %v1236_v21 = vld [vmem:[%s1879_s1 + $0x10] sm:$0xff]  ;;  %v215_v25 = vlaneseq }
  0x14   : > { %1295 = vset.pattern.permute.xlu1 %v1362_v0  ;;  %1294 = vset.pattern.permute.xlu0 %v1362_v0  ;;  %s1190_s28 = sshll.u32 %s1890_s27, 3  ;;  %v341_v18 = vunpack.c.l.b16 %v327_v17  ;;  %v1235_v22 = vld [vmem:[%s1879_s1 + $0x8] sm:$0xff]  ;;  %v1234_v23 = vld [vmem:[%s1879_s1] sm:$0xff]  ;;  %vm349_vm5 = vcmask 408576   ;;  %v1363_v32 = vmov 0.0  }
  0x15   : > { %1296 = vset.pattern.permute.xlu2 %v1362_v0  ;;  %s1445_s5 = scalar_lea.vmem %s1878_s0, %s1190_s28  ;;  %v216_v29 = vand.u32 127, %v215_v25 }
  0x16   : > { %v211_v1 = vld [vmem:[%s1445_s5 + $0x60] sm:$0xff]  ;;  %v201_v3 = vld [vmem:[%s1445_s5 + $0x10] sm:$0xff]  ;;  %v212_v4 = vld [vmem:[%s1445_s5 + $0x68] sm:$0xff]  ;;  %v345_v19 = vpack.c.b16 %v341_v18, %v341_v18 }
  0x17   : > { %v199_v2 = vld [vmem:[%s1445_s5] sm:$0xff]  ;;  %254 = vperm.xlu1 %1295, %v211_v1   ;;  %224 = vperm.xlu2 %1296, %v201_v3   ;;  %v200_v5 = vld [vmem:[%s1445_s5 + $0x8] sm:$0xff]  ;;  %v202_v6 = vld [vmem:[%s1445_s5 + $0x18] sm:$0xff] }
  0x18   : > { %218 = vperm.xlu0 %1294, %v199_v2   ;;  %v206_v7 = vld [vmem:[%s1445_s5 + $0x38] sm:$0xff]  ;;  %v205_v8 = vld [vmem:[%s1445_s5 + $0x30] sm:$0xff]  ;;  %v204_v13 = vld [vmem:[%s1445_s5 + $0x28] sm:$0xff]  ;;  %v376_v20 = vsel %vm374_vm0, %v345_v19, 0 }
  0x19   : > { %v209_v9 = vld [vmem:[%s1445_s5 + $0x50] sm:$0xff]  ;;  %v210_v11 = vld [vmem:[%s1445_s5 + $0x58] sm:$0xff]  ;;  %v203_v14 = vld [vmem:[%s1445_s5 + $0x20] sm:$0xff]  ;;  %382 = vmatpush.bf16.msra.mxu0 %v376_v20  ;;  %1239 = vmatpush.bf16.msra.mxu3 %v376_v20 }
  0x1a   : > { %v213_v10 = vld [vmem:[%s1445_s5 + $0x70] sm:$0xff]  ;;  %v214_v12 = vld [vmem:[%s1445_s5 + $0x78] sm:$0xff]  ;;  %v207_v15 = vld [vmem:[%s1445_s5 + $0x40] sm:$0xff]  ;;  %1237 = vmatpush.bf16.msra.mxu1 %v376_v20  ;;  %1238 = vmatpush.bf16.msra.mxu2 %v376_v20 }
  0x1b   : > { %v208_v16 = vld [vmem:[%s1445_s5 + $0x48] sm:$0xff]  ;;  %s1318_s5 = scalar_lea.hbm %s1882_s4, 16 }
  0x1d   : > { %383 = vmatpush.bf16.msra.mxu0 %v1236_v21  ;;  %1242 = vmatpush.bf16.msra.mxu3 %v1236_v21 }
  0x1e   : > { %1240 = vmatpush.bf16.msra.mxu1 %v1236_v21  ;;  %1241 = vmatpush.bf16.msra.mxu2 %v1236_v21 }
  0x1f   : > { %257 = vperm.xlu1 %1295, %v212_v4   ;;  %227 = vperm.xlu2 %1296, %v202_v6  }
  0x20   : > { %221 = vperm.xlu0 %1294, %v200_v5  }
  0x21   : > { %384 = vmatpush.bf16.msra.mxu0 %v1235_v22  ;;  %1245 = vmatpush.bf16.msra.mxu3 %v1235_v22 }
  0x22   : > { %1243 = vmatpush.bf16.msra.mxu1 %v1235_v22  ;;  %1244 = vmatpush.bf16.msra.mxu2 %v1235_v22 }
  0x25   : > { %385 = vmatpush.bf16.msra.mxu0 %v1234_v23  ;;  %1248 = vmatpush.bf16.msra.mxu3 %v1234_v23 }
  0x26   : > { %1246 = vmatpush.bf16.msra.mxu1 %v1234_v23  ;;  %1247 = vmatpush.bf16.msra.mxu2 %v1234_v23 }
  0x27   : > { %239 = vperm.xlu1 %1295, %v206_v7   ;;  %248 = vperm.xlu2 %1296, %v209_v9  }
  0x28   : > { %236 = vperm.xlu0 %1294, %v205_v8  }
  0x2f   : > { %260 = vperm.xlu1 %1295, %v213_v10   ;;  %263 = vperm.xlu2 %1296, %v214_v12  }
  0x30   : > { %251 = vperm.xlu0 %1294, %v210_v11  }
  0x37   : > { %233 = vperm.xlu1 %1295, %v204_v13   ;;  %242 = vperm.xlu2 %1296, %v207_v15  }
  0x38   : > { %230 = vperm.xlu0 %1294, %v203_v14  }
  0x40   : > { %245 = vperm.xlu0 %1294, %v208_v16  }
  0x71   : > { %v225_v24 = vpop.permute.xlu2 %224 }
  0x72   : > { %vm267_vm8 = vcmp.eq.s32.totalorder %v225_v24, %v216_v29 }
  0x73   : > { %v1193_v46 = vsel %vm267_vm8, 1.0, %v1363_v32  ;;  %vm765_vm8 = vcmask 193664  }
  0x79   : > { %v228_v28 = vpop.permute.xlu2 %227 }
  0x7a   : > { %vm268_vm9 = vcmp.eq.s32.totalorder %v228_v28, %v216_v29 }
  0x7b   : > { %v1194_v47 = vsel %vm268_vm9, 1.0, %v1363_v32  ;;  %vm982_vm9 = vcmask 389440  }
  0x7c   : > { %v314_v54 = vpack.c.bf16 %v1194_v47, %v1193_v46 }
  0x81   : > { %v249_v39 = vpop.permute.xlu2 %248 }
  0x82   : > { %vm275_vm10 = vcmp.eq.s32.totalorder %v249_v39, %v216_v29 }
  0x83   : > { %v1201_v50 = vsel %vm275_vm10, 1.0, %v1363_v32  ;;  %vm980_vm10 = vcmask 392512  }
  0x89   : > { %v255_v26 = vpop.permute.xlu1 %254  ;;  %v264_v45 = vpop.permute.xlu2 %263 }
  0x8a   : > { %v219_v27 = vpop.permute.xlu0 %218  ;;  %vm277_vm1 = vcmp.eq.s32.totalorder %v255_v26, %v216_v29  ;;  %vm280_vm11 = vcmp.eq.s32.totalorder %v264_v45, %v216_v29 }
  0x8b   : > { %vm265_vm2 = vcmp.eq.s32.totalorder %v219_v27, %v216_v29  ;;  %v1203_v33 = vsel %vm277_vm1, 1.0, %v1363_v32  ;;  %v1206_v51 = vsel %vm280_vm11, 1.0, %v1363_v32  ;;  %vm656_vm11 = vcmask 1043456  }
  0x8c   : > { %v1191_v34 = vsel %vm265_vm2, 1.0, %v1363_v32  ;;  %vm451_vm2 = vcmask 1046528  }
  0x91   : > { %v258_v30 = vpop.permute.xlu1 %257  ;;  %v243_v59 = vpop.permute.xlu2 %242 }
  0x92   : > { %v222_v31 = vpop.permute.xlu0 %221  ;;  %vm278_vm3 = vcmp.eq.s32.totalorder %v258_v30, %v216_v29  ;;  %vm273_vm0 = vcmp.eq.s32.totalorder %v243_v59, %v216_v29 }
  0x93   : > { %vm266_vm4 = vcmp.eq.s32.totalorder %v222_v31, %v216_v29  ;;  %v1204_v35 = vsel %vm278_vm3, 1.0, %v1363_v32  ;;  %v1199_v63 = vsel %vm273_vm0, 1.0, %v1363_v32  ;;  %vm674_vm3 = vcmask 1045504  }
  0x94   : > { %v1192_v36 = vsel %vm266_vm4, 1.0, %v1363_v32  ;;  %v319_v37 = vpack.c.bf16 %v1204_v35, %v1203_v33  ;;  %vm891_vm4 = vcmask 1044480   ;;  %vm646_vm0 = vcmask 1045509  }
  0x95   : > { %v313_v38 = vpack.c.bf16 %v1192_v36, %v1191_v34 }
  0x96   : > { %1225 = vmatmul.msk.bf16.vlgmr.msra.gmra.mxu3 %vm349_vm5, %v319_v37 }
  0x97   : > { %1219 = vmatmul.msk.bf16.vlgmr.msra.gmra.mxu0 %vm349_vm5, %v313_v38 }
  0x99   : > { %v240_v40 = vpop.permute.xlu1 %239 }
  0x9a   : > { %v237_v41 = vpop.permute.xlu0 %236  ;;  %vm272_vm6 = vcmp.eq.s32.totalorder %v240_v40, %v216_v29 }
  0x9b   : > { %vm271_vm7 = vcmp.eq.s32.totalorder %v237_v41, %v216_v29  ;;  %v1198_v42 = vsel %vm272_vm6, 1.0, %v1363_v32  ;;  %vm540_vm6 = vcmask 64512  }
  0x9c   : > { %v1197_v43 = vsel %vm271_vm7, 1.0, %v1363_v32  ;;  %vm763_vm7 = vcmask 195712  }
  0x9d   : > { %v316_v44 = vpack.c.bf16 %v1198_v42, %v1197_v43 }
  0x9f   : > { %1222 = vmatmul.msk.bf16.vlgmr.msra.gmra.mxu1 %vm349_vm5, %v316_v44 }
  0xa1   : > { %v261_v48 = vpop.permute.xlu1 %260 }
  0xa2   : > { %v252_v49 = vpop.permute.xlu0 %251  ;;  %vm279_vm12 = vcmp.eq.s32.totalorder %v261_v48, %v216_v29 }
  0xa3   : > { %vm276_vm13 = vcmp.eq.s32.totalorder %v252_v49, %v216_v29  ;;  %v1205_v52 = vsel %vm279_vm12, 1.0, %v1363_v32  ;;  %vm638_vm12 = vcmask 1041409  }
  0xa4   : > { %v1202_v53 = vsel %vm276_vm13, 1.0, %v1363_v32  ;;  %v320_v55 = vpack.c.bf16 %v1206_v51, %v1205_v52  ;;  %vm640_vm13 = vcmask 1042434  }
  0xa5   : > { %v318_v56 = vpack.c.bf16 %v1202_v53, %v1201_v50 }
  0xa6   : > { %1226 = vmatmul.msk.bf16.gmra.mxu3 %vm349_vm5, %v320_v55 }
  0xa7   : > { %1220 = vmatmul.msk.bf16.gmra.mxu0 %vm349_vm5, %v314_v54  ;;  %1224 = vmatmul.msk.bf16.vlgmr.msra.gmra.mxu2 %vm349_vm5, %v318_v56 }
  0xa9   : > { %v234_v58 = vpop.permute.xlu1 %233 }
  0xaa   : > { %v231_v57 = vpop.permute.xlu0 %230  ;;  %vm270_vm14 = vcmp.eq.s32.totalorder %v234_v58, %v216_v29 }
  0xab   : > { %vm269_vm15 = vcmp.eq.s32.totalorder %v231_v57, %v216_v29  ;;  %v1196_v60 = vsel %vm270_vm14, 1.0, %v1363_v32  ;;  %vm642_vm14 = vcmask 1043459  }
  0xac   : > { %v1195_v61 = vsel %vm269_vm15, 1.0, %v1363_v32  ;;  %vm644_vm15 = vcmask 1044484  }
  0xad   : > { %v315_v1 = vpack.c.bf16 %v1196_v60, %v1195_v61 }
  0xb2   : > { %v246_v62 = vpop.permute.xlu0 %245 }
  0xb3   : > { %vm274_vm1 = vcmp.eq.s32.totalorder %v246_v62, %v216_v29 }
  0xb4   : > { %v1200_v0 = vsel %vm274_vm1, 1.0, %v1363_v32  ;;  %vm648_vm1 = vcmask 1046534  }
  0xb5   : > { %v317_v2 = vpack.c.bf16 %v1200_v0, %v1199_v63 }
  0xb7   : > { %1221 = vmatmul.msk.bf16.gmra.mxu0 %vm349_vm5, %v315_v1  ;;  %1223 = vmatmul.msk.bf16.gmra.mxu1 %vm349_vm5, %v317_v2  ;;  %vm542_vm5 = vcmask 63488  }
 0x114   : > { %v1483_v3 = vpop.f32.mrf.mxu0 }
 0x115   : > { %v452_v12 = vrot.slane %v1483_v3, 1  ;;  %v675_v13 = vrot.slane %v1483_v3, 2  ;;  %v892_v19 = vrot.slane %v1483_v3, 3 }
 0x119   : > { %v1511_v18 = vpop.f32.mrf.mxu3 }
 0x11a   : > { %v470_v37 = vrot.slane %v1511_v18, 1  ;;  %v910_v38 = vrot.slane %v1511_v18, 3  ;;  %v693_v44 = vrot.slane %v1511_v18, 2 }
 0x11c   : > { %v1485_v4 = vpop.f32.mrf.mxu0  ;;  %v1487_v5 = vpop.f32.mrf.mxu1 }
 0x11d   : > { %v676_v6 = vrot.slane %v1485_v4, 2  ;;  %v453_v7 = vrot.slane %v1485_v4, 1  ;;  %v893_v9 = vrot.slane %v1485_v4, 3  ;;  %v461_v20 = vrot.slane %v1487_v5, 1 }
 0x11e   : > { %v901_v21 = vrot.slane %v1487_v5, 3  ;;  %v684_v27 = vrot.slane %v1487_v5, 2 }
 0x11f   : > { %701 = vrot.lane.b32.xlu1 %v676_v6, %s1364_s14  ;;  %478 = vrot.lane.b32.xlu2 %v453_v7, %s1365_s20  ;;  %v454_v14 = vsel %vm451_vm2, %v452_v12, %v453_v7  ;;  %v677_v15 = vsel %vm674_vm3, %v675_v13, %v676_v6  ;;  %v894_v22 = vsel %vm891_vm4, %v892_v19, %v893_v9 }
 0x121   : > { %v1524_v26 = vpop.f32.mrf.mxu3 }
 0x122   : > { %v471_v29 = vrot.slane %v1524_v26, 1  ;;  %v694_v33 = vrot.slane %v1524_v26, 2  ;;  %v911_v36 = vrot.slane %v1524_v26, 3 }
 0x124   : > { %v1493_v8 = vpop.f32.mrf.mxu1  ;;  %v1539_v35 = vpop.f32.mrf.mxu0  ;;  %v472_v40 = vsel %vm451_vm2, %v470_v37, %v471_v29  ;;  %v912_v41 = vsel %vm891_vm4, %v910_v38, %v911_v36  ;;  %v695_v47 = vsel %vm674_vm3, %v693_v44, %v694_v33 }
 0x125   : > { %v902_v10 = vrot.slane %v1493_v8, 3  ;;  %v462_v11 = vrot.slane %v1493_v8, 1  ;;  %v685_v16 = vrot.slane %v1493_v8, 2  ;;  %v455_v55 = vrot.slane %v1539_v35, 1 }
 0x126   : > { %v678_v56 = vrot.slane %v1539_v35, 2  ;;  %v895_v62 = vrot.slane %v1539_v35, 3 }
 0x127   : > { %918 = vrot.lane.b32.xlu1 %v893_v9, %s1366_s22  ;;  %930 = vrot.lane.b32.xlu0 %v902_v10, %s1366_s22  ;;  %v463_v23 = vsel %vm451_vm2, %v461_v20, %v462_v11  ;;  %v903_v24 = vsel %vm891_vm4, %v901_v21, %v902_v10  ;;  %v686_v30 = vsel %vm674_vm3, %v684_v27, %v685_v16 }
 0x128   : > { %490 = vrot.lane.b32.xlu2 %v462_v11, %s1365_s20 }
 0x129   : > { %v1582_v59 = vpop.f32.mrf.mxu3 }
 0x12a   : > { %v1508_v17 = vpop.f32.mrf.mxu2  ;;  %v913_v44 = vrot.slane %v1582_v59, 3 }
 0x12b   : > { %v690_v32 = vrot.slane %v1508_v17, 2  ;;  %v467_v45 = vrot.slane %v1508_v17, 1  ;;  %v907_v50 = vrot.slane %v1508_v17, 3 }
 0x12c   : > { %v1555_v43 = vpop.f32.mrf.mxu0 }
 0x12d   : > { %v679_v46 = vrot.slane %v1555_v43, 2  ;;  %v896_v51 = vrot.slane %v1555_v43, 3  ;;  %v456_v54 = vrot.slane %v1555_v43, 1 }
 0x12f   : > { %476 = vrot.lane.b32.xlu1 %v454_v14, %s1365_s20  ;;  %699 = vrot.lane.b32.xlu0 %v677_v15, %s1364_s14  ;;  %v457_v57 = vsel %vm451_vm2, %v455_v55, %v456_v54  ;;  %v680_v58 = vsel %vm674_vm3, %v678_v56, %v679_v46  ;;  %v897_v0 = vsel %vm891_vm4, %v895_v62, %v896_v51  ;;  %v696_v14 = vrot.slane %v1582_v59, 2 }
 0x130   : > { %713 = vrot.lane.b32.xlu2 %v685_v16, %s1364_s14 }
 0x131   : > { %v1593_v2 = vpop.f32.mrf.mxu3 }
 0x132   : > { %v1522_v25 = vpop.f32.mrf.mxu2  ;;  %v474_v10 = vrot.slane %v1593_v2, 1  ;;  %v697_v12 = vrot.slane %v1593_v2, 2 }
 0x133   : > { %v468_v28 = vrot.slane %v1522_v25, 1  ;;  %v691_v31 = vrot.slane %v1522_v25, 2  ;;  %v908_v39 = vrot.slane %v1522_v25, 3 }
 0x134   : > { %v1553_v42 = vpop.f32.mrf.mxu1  ;;  %v1596_v7 = vpop.f32.mrf.mxu0  ;;  %v698_v16 = vsel %vm674_vm3, %v696_v14, %v697_v12 }
 0x135   : > { %v692_v34 = vsel %vm674_vm3, %v690_v32, %v691_v31  ;;  %v469_v48 = vsel %vm451_vm2, %v467_v45, %v468_v28  ;;  %v909_v52 = vsel %vm891_vm4, %v907_v50, %v908_v39  ;;  %v687_v61 = vrot.slane %v1553_v42, 2 }
 0x136   : > { %v904_v6 = vrot.slane %v1553_v42, 3  ;;  %v464_v13 = vrot.slane %v1553_v42, 1  ;;  %v898_v32 = vrot.slane %v1596_v7, 3 }
 0x137   : > { %916 = vrot.lane.b32.xlu0 %v894_v22, %s1366_s22  ;;  %488 = vrot.lane.b32.xlu1 %v463_v23, %s1365_s20  ;;  %v473_v22 = vrot.slane %v1582_v59, 1  ;;  %v458_v23 = vrot.slane %v1596_v7, 1 }
 0x138   : > { %928 = vrot.lane.b32.xlu2 %v903_v24, %s1366_s22 }
 0x139   : > { %v475_v24 = vsel %vm451_vm2, %v473_v22, %v474_v10 }
 0x13c   : > { %v1565_v49 = vpop.f32.mrf.mxu1  ;;  %v1610_v19 = vpop.f32.mrf.mxu0 }
 0x13d   : > { %v465_v53 = vrot.slane %v1565_v49, 1  ;;  %v688_v60 = vrot.slane %v1565_v49, 2  ;;  %v905_v1 = vrot.slane %v1565_v49, 3  ;;  %v459_v21 = vrot.slane %v1610_v19, 1 }
 0x13f   : > { %711 = vrot.lane.b32.xlu1 %v686_v30, %s1364_s14  ;;  %498 = vrot.lane.b32.xlu0 %v468_v28, %s1365_s20  ;;  %v689_v63 = vsel %vm674_vm3, %v687_v61, %v688_v60  ;;  %v906_v9 = vsel %vm891_vm4, %v904_v6, %v905_v1  ;;  %v466_v15 = vsel %vm451_vm2, %v464_v13, %v465_v53  ;;  %v899_v30 = vrot.slane %v1610_v19, 3 }
 0x140   : > { %502 = vrot.lane.b32.xlu2 %v471_v29, %s1365_s20  ;;  %v460_v27 = vsel %vm451_vm2, %v458_v23, %v459_v21  ;;  %vm650_vm2 = vcmask 1047559  }
 0x147   : > { %721 = vrot.lane.b32.xlu1 %v691_v31, %s1364_s14  ;;  %719 = vrot.lane.b32.xlu0 %v692_v34, %s1364_s14  ;;  %v900_v34 = vsel %vm891_vm4, %v898_v32, %v899_v30 }
 0x148   : > { %725 = vrot.lane.b32.xlu2 %v694_v33, %s1364_s14  ;;  %v682_v33 = vrot.slane %v1610_v19, 2 }
 0x14f   : > { %500 = vrot.lane.b32.xlu1 %v472_v40, %s1365_s20  ;;  %940 = vrot.lane.b32.xlu0 %v912_v41, %s1366_s22  ;;  %v914_v40 = vrot.slane %v1593_v2, 3  ;;  %v681_v41 = vrot.slane %v1596_v7, 2 }
 0x150   : > { %938 = vrot.lane.b32.xlu2 %v908_v39, %s1366_s22 }
 0x151   : > { %v683_v45 = vsel %vm674_vm3, %v681_v41, %v682_v33 }
 0x157   : > { %723 = vrot.lane.b32.xlu1 %v695_v47, %s1364_s14  ;;  %705 = vrot.lane.b32.xlu0 %v679_v46, %s1364_s14  ;;  %v915_v46 = vsel %vm891_vm4, %v913_v44, %v914_v40 }
 0x158   : > { %496 = vrot.lane.b32.xlu2 %v469_v48, %s1365_s20 }
 0x15f   : > { %936 = vrot.lane.b32.xlu1 %v909_v52, %s1366_s22  ;;  %922 = vrot.lane.b32.xlu0 %v896_v51, %s1366_s22 }
 0x160   : > { %494 = vrot.lane.b32.xlu2 %v465_v53, %s1365_s20 }
 0x167   : > { %482 = vrot.lane.b32.xlu1 %v456_v54, %s1365_s20  ;;  %480 = vrot.lane.b32.xlu0 %v457_v57, %s1365_s20 }
 0x168   : > { %703 = vrot.lane.b32.xlu2 %v680_v58, %s1364_s14 }
 0x16f   : > { %717 = vrot.lane.b32.xlu1 %v688_v60, %s1364_s14  ;;  %715 = vrot.lane.b32.xlu0 %v689_v63, %s1364_s14 }
 0x170   : > { %920 = vrot.lane.b32.xlu2 %v897_v0, %s1366_s22 }
 0x177   : > { %934 = vrot.lane.b32.xlu1 %v905_v1, %s1366_s22  ;;  %932 = vrot.lane.b32.xlu0 %v906_v9, %s1366_s22 }
 0x178   : > { %506 = vrot.lane.b32.xlu2 %v474_v10, %s1365_s20 }
 0x179   : > { %v479_v11 = vpop.permute.xlu2 %478 }
 0x17a   : > { %v525_v37 = vadd.f32 %v479_v11, %v1485_v4 }
 0x17c   : > { %v543_v57 = vsel %vm542_vm5, %v525_v37, -inf }
 0x17f   : > { %729 = vrot.lane.b32.xlu0 %v697_v12, %s1364_s14  ;;  %492 = vrot.lane.b32.xlu1 %v466_v15, %s1365_s20 }
 0x180   : > { %727 = vrot.lane.b32.xlu2 %v698_v16, %s1364_s14 }
 0x182   : > { %v491_v20 = vpop.permute.xlu2 %490 }
 0x183   : > { %v531_v28 = vadd.f32 %v491_v20, %v1493_v8 }
 0x185   : > { %v570_v10 = vsel %vm542_vm5, %v531_v28, -inf }
 0x187   : > { %486 = vrot.lane.b32.xlu0 %v459_v21, %s1365_s20  ;;  %504 = vrot.lane.b32.xlu1 %v475_v24, %s1365_s20 }
 0x188   : > { %484 = vrot.lane.b32.xlu2 %v460_v27, %s1365_s20  ;;  %s191_s20 = scalar_lea.vmem [#allocation2], %s1188_s8 }
 0x18a   : > { %v714_v29 = vpop.permute.xlu2 %713 }
 0x18b   : > { %v754_v31 = vadd.f32 %v714_v29, %v531_v28 }
 0x18f   : > { %926 = vrot.lane.b32.xlu0 %v899_v30, %s1366_s22  ;;  %709 = vrot.lane.b32.xlu1 %v682_v33, %s1364_s14 }
 0x190   : > { %924 = vrot.lane.b32.xlu2 %v900_v34, %s1366_s22 }
 0x191   : > { %v702_v38 = vpop.permute.xlu1 %701 }
 0x192   : > { %v748_v8 = vadd.f32 %v702_v38, %v525_v37  ;;  %v929_v39 = vpop.permute.xlu2 %928 }
 0x197   : > { %707 = vrot.lane.b32.xlu0 %v683_v45, %s1364_s14  ;;  %942 = vrot.lane.b32.xlu1 %v911_v36, %s1366_s22 }
 0x198   : > { %944 = vrot.lane.b32.xlu2 %v915_v46, %s1366_s22 }
 0x199   : > { %v919_v4 = vpop.permute.xlu1 %918  ;;  %v931_v47 = vpop.permute.xlu0 %930 }
 0x19a   : > { %v965_v48 = vadd.f32 %v919_v4, %v748_v8  ;;  %v503_v50 = vpop.permute.xlu2 %502  ;;  %v971_v51 = vadd.f32 %v931_v47, %v754_v31 }
 0x19b   : > { %v1642_v52 = vadd.f32 %v503_v50, %v1524_v26  ;;  %v766_v26 = vsel %vm765_vm8, %v748_v8, -inf }
 0x19c   : > { %v983_v11 = vsel %vm982_vm9, %v965_v48, -inf  ;;  %v1010_v27 = vsel %vm982_vm9, %v971_v51, -inf }
 0x19f   : > { %946 = vrot.lane.b32.xlu0 %v914_v40, %s1366_s22  ;;  %s1122_s22 = sshll.u32 %s191_s20, 4  ;;  %s1123_s22 = int_to_ptr.vmem [resolvable:$true] %s1122_s22 }
 0x1a1   : > { %v477_v53 = vpop.permute.xlu1 %476  ;;  %v700_v54 = vpop.permute.xlu0 %699 }
 0x1a2   : > { %v524_v55 = vadd.f32 %v477_v53, %v1483_v3  ;;  %v726_v56 = vpop.permute.xlu2 %725 }
 0x1a3   : > { %v1646_v36 = vadd.f32 %v726_v56, %v1642_v52 }
 0x1a4   : > { %v541_v58 = vsel %vm540_vm6, %v524_v55, -inf  ;;  %v747_v60 = vadd.f32 %v700_v54, %v524_v55 }
 0x1a5   : > { %v544_v61 = vmax.f32 %v541_v58, %v543_v57 }
 0x1a6   : > { %v764_v62 = vsel %vm763_vm7, %v747_v60, -inf }
 0x1a7   : > { %v767_v63 = vmax.f32 %v764_v62, %v766_v26  ;;  %v545_v54 = vrot.slane %v544_v61, 4 }
 0x1a9   : > { %v489_v0 = vpop.permute.xlu1 %488  ;;  %v917_v3 = vpop.permute.xlu0 %916  ;;  %v768_v55 = vrot.slane %v767_v63, 4 }
 0x1aa   : > { %v530_v1 = vadd.f32 %v489_v0, %v1487_v5  ;;  %v964_v6 = vadd.f32 %v917_v3, %v747_v60  ;;  %v939_v9 = vpop.permute.xlu2 %938  ;;  %v793_v5 = vsel %vm765_vm8, %v754_v31, -inf }
 0x1ac   : > { %v569_v12 = vsel %vm540_vm6, %v530_v1, -inf  ;;  %v981_v13 = vsel %vm980_vm10, %v964_v6, -inf  ;;  %v769_v6 = vmax.f32 %v767_v63, %v768_v55 }
 0x1ad   : > { %v571_v14 = vmax.f32 %v569_v12, %v570_v10  ;;  %v984_v15 = vmax.f32 %v981_v13, %v983_v11 }
 0x1af   : > { %v572_v56 = vrot.slane %v571_v14, 4  ;;  %v985_v57 = vrot.slane %v984_v15, 4 }
 0x1b1   : > { %v712_v16 = vpop.permute.xlu1 %711  ;;  %v499_v20 = vpop.permute.xlu0 %498  ;;  %v986_v10 = vmax.f32 %v984_v15, %v985_v57 }
 0x1b2   : > { %v753_v21 = vadd.f32 %v712_v16, %v530_v1  ;;  %v497_v24 = vpop.permute.xlu2 %496  ;;  %v535_v33 = vadd.f32 %v499_v20, %v1522_v25  ;;  %v546_v1 = vmax.f32 %v544_v61, %v545_v54 }
 0x1b3   : > { %v534_v32 = vadd.f32 %v497_v24, %v1508_v17  ;;  %v987_v24 = vrot.slane %v986_v10, 2 }
 0x1b4   : > { %v792_v22 = vsel %vm763_vm7, %v753_v21, -inf  ;;  %v970_v23 = vadd.f32 %v929_v39, %v753_v21  ;;  %v588_v51 = vsel %vm542_vm5, %v535_v33, -inf }
 0x1b5   : > { %v794_v28 = vmax.f32 %v792_v22, %v793_v5  ;;  %v587_v50 = vsel %vm540_vm6, %v534_v32, -inf  ;;  %v547_v22 = vrot.slane %v546_v1, 2 }
 0x1b6   : > { %v1009_v29 = vsel %vm980_vm10, %v970_v23, -inf  ;;  %v589_v62 = vmax.f32 %v587_v50, %v588_v51  ;;  %v770_v23 = vrot.slane %v769_v6, 2 }
 0x1b7   : > { %v1011_v30 = vmax.f32 %v1009_v29, %v1010_v27  ;;  %v795_v26 = vrot.slane %v794_v28, 4 }
 0x1b8   : > { %v590_v16 = vrot.slane %v589_v62, 4 }
 0x1b9   : > { %v722_v34 = vpop.permute.xlu1 %721  ;;  %v720_v37 = vpop.permute.xlu0 %719  ;;  %v796_v12 = vmax.f32 %v794_v28, %v795_v26  ;;  %v1012_v13 = vrot.slane %v1011_v30, 4  ;;  %v548_v28 = vmax.f32 %v546_v1, %v547_v22 }
 0x1ba   : > { %v758_v38 = vadd.f32 %v722_v34, %v535_v33  ;;  %v757_v8 = vadd.f32 %v720_v37, %v534_v32  ;;  %v1669_v46 = vpop.permute.xlu2 %494  ;;  %v591_v15 = vmax.f32 %v589_v62, %v590_v16  ;;  %v771_v32 = vmax.f32 %v769_v6, %v770_v23 }
 0x1bb   : > { %v797_v63 = vrot.slane %v796_v12, 2  ;;  %v988_v37 = vmax.f32 %v986_v10, %v987_v24  ;;  %v820_v6 = vsel %vm765_vm8, %v1646_v36, -inf }
 0x1bc   : > { %v811_v40 = vsel %vm765_vm8, %v758_v38, -inf  ;;  %v975_v39 = vadd.f32 %v939_v9, %v758_v38  ;;  %v810_v31 = vsel %vm763_vm7, %v757_v8, -inf  ;;  %v573_v9 = vmax.f32 %v571_v14, %v572_v56 }
 0x1bd   : > { %v1665_v41 = vmax.f32 %v810_v31, %v811_v40  ;;  %v1013_v14 = vmax.f32 %v1011_v30, %v1012_v13  ;;  %v989_v55 = vrot.slane %v988_v37, 1 }
 0x1be   : > { %v1028_v60 = vsel %vm982_vm9, %v975_v39, -inf  ;;  %v574_v5 = vrot.slane %v573_v9, 2 }
 0x1bf   : > { %v1014_v39 = vrot.slane %v1013_v14, 2 }
 0x1c0   : > { %v575_v34 = vmax.f32 %v573_v9, %v574_v5 }
 0x1c1   : > { %v501_v44 = vpop.permute.xlu1 %500  ;;  %v1667_v45 = vpop.permute.xlu0 %940 }
 0x1c2   : > { %v704_v47 = vpop.permute.xlu2 %703  ;;  %v536_v11 = vadd.f32 %v501_v44, %v1511_v18  ;;  %v597_v18 = vsel %vm542_vm5, %v1642_v52, -inf  ;;  %v576_v54 = vrot.slane %v575_v34, 1 }
 0x1c4   : > { %v596_v27 = vsel %vm540_vm6, %v536_v11, -inf  ;;  %v577_v10 = vmax.f32 %v575_v34, %v576_v54 }
 0x1c5   : > { %v598_v33 = vmax.f32 %v596_v27, %v597_v18 }
 0x1c7   : > { %v599_v50 = vrot.slane %v598_v33, 4 }
 0x1c9   : > { %v724_v4 = vpop.permute.xlu1 %723  ;;  %v706_v17 = vpop.permute.xlu0 %705  ;;  %v600_v9 = vmax.f32 %v598_v33, %v599_v50 }
 0x1ca   : > { %v921_v3 = vpop.permute.xlu2 %920  ;;  %v1691_v56 = vadd.f32 %v724_v4, %v536_v11 }
 0x1cc   : > { %v819_v13 = vsel %vm763_vm7, %v1691_v56, -inf }
 0x1d1   : > { %v937_v25 = vpop.permute.xlu1 %936  ;;  %v923_v48 = vpop.permute.xlu0 %922 }
 0x1d2   : > { %v974_v53 = vadd.f32 %v937_v25, %v757_v8  ;;  %v1683_v38 = vpop.permute.xlu2 %506  ;;  %v549_v25 = vrot.slane %v548_v28, 1 }
 0x1d4   : > { %v1027_v58 = vsel %vm980_vm10, %v974_v53, -inf  ;;  %v772_v53 = vrot.slane %v771_v32, 1  ;;  %v550_v1 = vmax.f32 %v548_v28, %v549_v25 }
 0x1d5   : > { %v1675_v0 = vmax.f32 %v1027_v58, %v1028_v60  ;;  %v1015_v58 = vmax.f32 %v1013_v14, %v1014_v39 }
 0x1d6   : > { %v614_v27 = vpack.c.bf16 %v550_v1, %v550_v1 }
 0x1d7   : > { %v1016_v4 = vrot.slane %v1015_v58, 1 }
 0x1d9   : > { %v483_v20 = vpop.permute.xlu1 %482  ;;  %v481_v21 = vpop.permute.xlu0 %480  ;;  %v1704_v28 = vmax.f32 %v1015_v58, %v1016_v4 }
 0x1da   : > { %v527_v29 = vadd.f32 %v483_v20, %v1555_v43  ;;  %v526_v61 = vadd.f32 %v481_v21, %v1539_v35  ;;  %v798_v43 = vmax.f32 %v796_v12, %v797_v63  ;;  %v592_v35 = vrot.slane %v591_v15, 2  ;;  %v1700_v23 = vpop.permute.xlu2 %727 }
 0x1db   : > { %v990_v12 = vmax.f32 %v988_v37, %v989_v55  ;;  %v813_v20 = vrot.slane %v1665_v41, 4 }
 0x1dc   : > { %v552_v8 = vsel %vm542_vm5, %v527_v29, -inf  ;;  %v551_v40 = vsel %vm540_vm6, %v526_v61, -inf  ;;  %v750_v44 = vadd.f32 %v706_v17, %v527_v29  ;;  %v749_v52 = vadd.f32 %v704_v47, %v526_v61 }
 0x1dd   : > { %v553_v51 = vmax.f32 %v551_v40, %v552_v8  ;;  %v799_v57 = vrot.slane %v798_v43, 1  ;;  %v593_v60 = vmax.f32 %v591_v15, %v592_v35  ;;  %v773_v47 = vmax.f32 %v771_v32, %v772_v53 }
 0x1de   : > { %v967_v26 = vadd.f32 %v923_v48, %v750_v44  ;;  %v966_v62 = vadd.f32 %v921_v3, %v749_v52  ;;  %v775_v3 = vsel %vm765_vm8, %v750_v44, -inf  ;;  %v774_v5 = vsel %vm763_vm7, %v749_v52, -inf }
 0x1df   : > { %v554_v17 = vrot.slane %v553_v51, 4  ;;  %v800_v16 = vmax.f32 %v798_v43, %v799_v57  ;;  %v594_v11 = vrot.slane %v593_v60, 1  ;;  %v601_v29 = vrot.slane %v600_v9, 2 }
 0x1e0   : > { %v992_v22 = vsel %vm982_vm9, %v967_v26, -inf  ;;  %v991_v24 = vsel %vm980_vm10, %v966_v62, -inf  ;;  %v821_v61 = vmax.f32 %v819_v13, %v820_v6  ;;  %v837_v14 = vpack.c.bf16 %v773_v47, %v773_v47 }
 0x1e1   : > { %v1687_v31 = vpop.permute.xlu1 %717  ;;  %v1689_v30 = vpop.permute.xlu0 %715  ;;  %v555_v63 = vmax.f32 %v553_v51, %v554_v17  ;;  %v617_v15 = vpack.c.bf16 %v577_v10, %v577_v10  ;;  %v1054_v18 = vpack.c.bf16 %v990_v12, %v990_v12  ;;  %v533_v32 = vadd.f32 %v1669_v46, %v1565_v49 }
 0x1e2   : > { %v776_v33 = vmax.f32 %v774_v5, %v775_v3  ;;  %v993_v34 = vmax.f32 %v991_v24, %v992_v22  ;;  %v840_v37 = vpack.c.bf16 %v800_v16, %v800_v16  ;;  %v595_v8 = vmax.f32 %v593_v60, %v594_v11  ;;  %v485_v10 = vpop.permute.xlu2 %484 }
 0x1e3   : > { %v814_v40 = vmax.f32 %v1665_v41, %v813_v20  ;;  %v1709_v43 = vunpack.c.l.b16 %v614_v27  ;;  %v602_v39 = vmax.f32 %v600_v9, %v601_v29  ;;  %v822_v35 = vrot.slane %v821_v61, 4 }
 0x1e4   : > { %v556_v44 = vrot.slane %v555_v63, 2  ;;  %v1711_v52 = vunpack.c.l.b16 %v837_v14  ;;  %v1713_v25 = vunpack.c.l.b16 %v617_v15  ;;  %v1715_v50 = vunpack.c.l.b16 %v1054_v18 }
 0x1e5   : > { %v1030_v51 = vrot.slane %v1675_v0, 4  ;;  %v1057_v49 = vpack.c.bf16 %v1704_v28, %v1704_v28  ;;  %v579_v46 = vsel %vm542_vm5, %v533_v32, -inf  ;;  %v777_v53 = vrot.slane %v776_v33, 4 }
 0x1e6   : > { %v994_v41 = vrot.slane %v993_v34, 4  ;;  %v1721_v57 = vunpack.c.l.b16 %v840_v37  ;;  %v619_v58 = vpack.c.bf16 %v595_v8, %v595_v8  ;;  %v815_v60 = vrot.slane %v814_v40, 2 }
 0x1e7   : > { %v603_v62 = vrot.slane %v602_v39, 1  ;;  %v823_v1 = vmax.f32 %v821_v61, %v822_v35  ;;  %v539_v6 = vadd.f32 %v1683_v38, %v1593_v2  ;;  %v557_v9 = vmax.f32 %v555_v63, %v556_v44 }
 0x1e8   : > { %v1031_v17 = vmax.f32 %v1675_v0, %v1030_v51  ;;  %v756_v47 = vadd.f32 %v1687_v31, %v533_v32  ;;  %v778_v16 = vmax.f32 %v776_v33, %v777_v53  ;;  %v995_v4 = vmax.f32 %v993_v34, %v994_v41 }
 0x1e9   : > { %v935_v21 = vpop.permute.xlu1 %934  ;;  %v933_v48 = vpop.permute.xlu0 %932  ;;  %v1733_v20 = vunpack.c.l.b16 %v619_v58  ;;  %v1735_v2 = vmax.f32 %v814_v40, %v815_v60  ;;  %v976_v31 = vadd.f32 %v1667_v45, %v1691_v56  ;;  %v558_v3 = vrot.slane %v557_v9, 1 }
 0x1ea   : > { %v604_v5 = vmax.f32 %v602_v39, %v603_v62  ;;  %v824_v24 = vrot.slane %v823_v1, 2  ;;  %v1032_v27 = vrot.slane %v1031_v17, 2  ;;  %v606_v29 = vsel %vm542_vm5, %v539_v6, -inf  ;;  %v1757_v41 = vpop.permute.xlu2 %924 }
 0x1eb   : > { %v779_v61 = vrot.slane %v778_v16, 2  ;;  %v996_v63 = vrot.slane %v995_v4, 2  ;;  %v1742_v14 = vadd.f32 %v485_v10, %v1596_v7  ;;  %v559_v33 = vmax.f32 %v557_v9, %v558_v3 }
 0x1ec   : > { %v802_v34 = vsel %vm765_vm8, %v756_v47, -inf  ;;  %v620_v58 = vpack.c.bf16 %v604_v5, %v604_v5 }
 0x1ed   : > { %v997_v53 = vmax.f32 %v995_v4, %v996_v63  ;;  %v615_v60 = vpack.c.bf16 %v559_v33, %v559_v33 }
 0x1ee   : > { %v1768_v5 = vunpack.c.l.b16 %v620_v58 }
 0x1f1   : > { %v493_v54 = vpop.permute.xlu1 %492  ;;  %v730_v55 = vpop.permute.xlu0 %729 }
 0x1f2   : > { %v532_v26 = vadd.f32 %v493_v54, %v1553_v42  ;;  %v427_v42 = vld [vmem:[%s1880_s2] sm:$0xf]  ;;  %v1750_v7 = vadd.f32 %v730_v55, %v539_v6  ;;  %v1762_v6 = vmax.f32 %v1031_v17, %v1032_v27  ;;  %v1036_v17 = vsel %vm980_vm10, %v976_v31, -inf }
 0x1f3   : > { %v658_v38 = vsel %vm656_vm11, %v427_v42, 0  ;;  %v817_v42 = vrot.slane %v1735_v2, 1 }
 0x1f4   : > { %v578_v12 = vsel %vm540_vm6, %v532_v26, -inf  ;;  %v755_v13 = vadd.f32 %v1689_v30, %v532_v26  ;;  %v973_v30 = vadd.f32 %v935_v21, %v756_v47  ;;  %667 = vmatpush.bf16.msrb.mxu1 %v658_v38  ;;  %v829_v9 = vsel %vm765_vm8, %v1750_v7, -inf }
 0x1f5   : > { %v580_v11 = vmax.f32 %v578_v12, %v579_v46  ;;  %v780_v46 = vmax.f32 %v778_v16, %v779_v61  ;;  %v998_v38 = vrot.slane %v997_v53, 1  ;;  %v1034_v27 = vrot.slane %v1762_v6, 1 }
 0x1f6   : > { %v972_v0 = vadd.f32 %v933_v48, %v755_v13  ;;  %v801_v32 = vsel %vm763_vm7, %v755_v13, -inf  ;;  %v1019_v37 = vsel %vm982_vm9, %v973_v30, -inf  ;;  %v631_v30 = vunpack.c.l.b16 %v615_v60 }
 0x1f7   : > { %v581_v22 = vrot.slane %v580_v11, 4  ;;  %v803_v44 = vmax.f32 %v801_v32, %v802_v34  ;;  %v1774_v32 = vmax.f32 %v997_v53, %v998_v38 }
 0x1f8   : > { %v1018_v45 = vsel %vm980_vm10, %v972_v0, -inf  ;;  %v781_v0 = vrot.slane %v780_v46, 1  ;;  %v639_v31 = vsel %vm638_vm12, %v631_v30, %v1709_v43 }
 0x1f9   : > { %v582_v48 = vmax.f32 %v580_v11, %v581_v22  ;;  %v505_v15 = vpop.permute.xlu1 %504  ;;  %v487_v18 = vpop.permute.xlu0 %486  ;;  %v804_v10 = vrot.slane %v803_v44, 4 }
 0x1fa   : > { %v538_v56 = vadd.f32 %v505_v15, %v1582_v59  ;;  %v529_v21 = vadd.f32 %v487_v18, %v1610_v19  ;;  %v560_v59 = vsel %vm540_vm6, %v1742_v14, -inf  ;;  %v1020_v19 = vmax.f32 %v1018_v45, %v1019_v37  ;;  %v945_v37 = vpop.permute.xlu2 %944 }
 0x1fb   : > { %v583_v8 = vrot.slane %v582_v48, 2  ;;  %v805_v61 = vmax.f32 %v803_v44, %v804_v10  ;;  %v1772_v18 = vmax.f32 %v780_v46, %v781_v0 }
 0x1fc   : > { %v605_v40 = vsel %vm540_vm6, %v538_v56, -inf  ;;  %v761_v39 = vadd.f32 %v1700_v23, %v538_v56  ;;  %v561_v35 = vsel %vm542_vm5, %v529_v21, -inf  ;;  %v1760_v23 = vmax.f32 %v823_v1, %v824_v24 }
 0x1fd   : > { %v607_v51 = vmax.f32 %v605_v40, %v606_v29  ;;  %v562_v55 = vmax.f32 %v560_v59, %v561_v35  ;;  %v584_v26 = vmax.f32 %v582_v48, %v583_v8  ;;  %v1021_v12 = vrot.slane %v1020_v19, 4 }
 0x1fe   : > { %v828_v54 = vsel %vm763_vm7, %v761_v39, -inf  ;;  %v826_v24 = vrot.slane %v1760_v23, 1  ;;  %v806_v40 = vrot.slane %v805_v61, 2  ;;  %v978_v44 = vadd.f32 %v945_v37, %v761_v39 }
 0x1ff   : > { %v608_v62 = vrot.slane %v607_v51, 4  ;;  %v563_v47 = vrot.slane %v562_v55, 4  ;;  %v830_v16 = vmax.f32 %v828_v54, %v829_v9  ;;  %v585_v1 = vrot.slane %v584_v26, 1  ;;  %v429_v54 = vld [vmem:[%s1880_s2 + $0x8] sm:$0xf] }
 0x200   : > { %v1022_v63 = vmax.f32 %v1020_v19, %v1021_v12 }
 0x201   : > { %v609_v13 = vmax.f32 %v607_v51, %v608_v62  ;;  %v710_v4 = vpop.permute.xlu1 %709  ;;  %v927_v11 = vpop.permute.xlu0 %926  ;;  %v564_v3 = vmax.f32 %v562_v55, %v563_v47  ;;  %v831_v15 = vrot.slane %v830_v16, 4  ;;  %v586_v33 = vmax.f32 %v584_v26, %v585_v1 }
 0x202   : > { %v752_v56 = vadd.f32 %v710_v4, %v529_v21  ;;  %v1023_v35 = vrot.slane %v1022_v63, 2  ;;  %v1092_v26 = vsel %vm656_vm11, %v429_v54, 0 }
 0x203   : > { %v610_v22 = vrot.slane %v609_v13, 2  ;;  %v565_v29 = vrot.slane %v564_v3, 2  ;;  %v832_v59 = vmax.f32 %v830_v16, %v831_v15  ;;  %v618_v55 = vpack.c.bf16 %v586_v33, %v586_v33  ;;  %1101 = vmatpush.bf16.msrb.mxu3 %v1092_v26 }
 0x204   : > { %v969_v21 = vadd.f32 %v927_v11, %v752_v56  ;;  %v784_v60 = vsel %vm765_vm8, %v752_v56, -inf  ;;  %v1024_v1 = vmax.f32 %v1022_v63, %v1023_v35  ;;  %v1055_v26 = vpack.c.bf16 %v1774_v32, %v1774_v32 }
 0x205   : > { %v611_v48 = vmax.f32 %v609_v13, %v610_v22  ;;  %v566_v45 = vmax.f32 %v564_v3, %v565_v29  ;;  %v833_v12 = vrot.slane %v832_v59, 2  ;;  %v1045_v3 = vsel %vm980_vm10, %v978_v44, -inf }
 0x206   : > { %v1001_v16 = vsel %vm982_vm9, %v969_v21, -inf  ;;  %v634_v30 = vunpack.c.l.b16 %v618_v55  ;;  %v1073_v32 = vunpack.c.l.b16 %v1057_v49 }
 0x207   : > { %v612_v34 = vrot.slane %v611_v48, 1  ;;  %v567_v8 = vrot.slane %v566_v45, 1  ;;  %v834_v56 = vmax.f32 %v832_v59, %v833_v12 }
 0x209   : > { %v943_v19 = vpop.permute.xlu1 %942  ;;  %v708_v51 = vpop.permute.xlu0 %707  ;;  %v568_v46 = vmax.f32 %v566_v45, %v567_v8  ;;  %v613_v58 = vmax.f32 %v611_v48, %v612_v34 }
 0x20a   : > { %v977_v53 = vadd.f32 %v943_v19, %v1646_v36  ;;  %v751_v43 = vadd.f32 %v708_v51, %v1742_v14  ;;  %v807_v36 = vmax.f32 %v805_v61, %v806_v40 }
 0x20b   : > { %v616_v39 = vpack.c.bf16 %v568_v46, %v568_v46  ;;  %v621_v22 = vpack.c.bf16 %v613_v58, %v613_v58 }
 0x20c   : > { %v1037_v62 = vsel %vm982_vm9, %v977_v53, -inf  ;;  %v783_v9 = vsel %vm763_vm7, %v751_v43, -inf  ;;  %v968_v47 = vadd.f32 %v1757_v41, %v751_v43  ;;  %v808_v45 = vrot.slane %v807_v36, 1 }
 0x20d   : > { %v1038_v14 = vmax.f32 %v1036_v17, %v1037_v62  ;;  %v785_v10 = vmax.f32 %v783_v9, %v784_v60  ;;  %v632_v13 = vunpack.c.l.b16 %v616_v39  ;;  %v637_v35 = vunpack.c.l.b16 %v621_v22 }
 0x20e   : > { %v1000_v4 = vsel %vm980_vm10, %v968_v47, -inf  ;;  %v809_v21 = vmax.f32 %v807_v36, %v808_v45  ;;  %v835_v53 = vrot.slane %v834_v56, 1  ;;  %v818_v60 = vmax.f32 %v1735_v2, %v817_v42 }
 0x20f   : > { %v1039_v11 = vrot.slane %v1038_v14, 4  ;;  %v786_v0 = vrot.slane %v785_v10, 4  ;;  %v1002_v38 = vmax.f32 %v1000_v4, %v1001_v16  ;;  %v641_v41 = vsel %vm640_vm13, %v632_v13, %v639_v31 }
 0x210   : > { %v643_v15 = vsel %vm642_vm14, %v1713_v25, %v641_v41  ;;  %v1025_v31 = vrot.slane %v1024_v1, 1  ;;  %v1035_v36 = vmax.f32 %v1762_v6, %v1034_v27  ;;  %v836_v2 = vmax.f32 %v834_v56, %v835_v53 }
 0x211   : > { %v1040_v29 = vmax.f32 %v1038_v14, %v1039_v11  ;;  %v787_v17 = vmax.f32 %v785_v10, %v786_v0  ;;  %v1003_v61 = vrot.slane %v1002_v38, 4  ;;  %v947_v48 = vpop.permute.xlu0 %946  ;;  %v645_v34 = vsel %vm644_vm15, %v634_v30, %v643_v15 }
 0x212   : > { %v979_v33 = vadd.f32 %v947_v48, %v1750_v7  ;;  %v647_v63 = vsel %vm646_vm0, %v1733_v20, %v645_v34  ;;  %v838_v7 = vpack.c.bf16 %v1772_v18, %v1772_v18  ;;  %v1026_v39 = vmax.f32 %v1024_v1, %v1025_v31 }
 0x213   : > { %v1041_v37 = vrot.slane %v1040_v29, 2  ;;  %v788_v8 = vrot.slane %v787_v17, 2  ;;  %v1004_v40 = vmax.f32 %v1002_v38, %v1003_v61  ;;  %v649_v19 = vsel %vm648_vm1, %v1768_v5, %v647_v63 }
 0x214   : > { %v1046_v44 = vsel %vm982_vm9, %v979_v33, -inf  ;;  %v651_v43 = vsel %vm650_vm2, %v637_v35, %v649_v19  ;;  %v827_v5 = vmax.f32 %v1760_v23, %v826_v24  ;;  %v854_v14 = vunpack.c.l.b16 %v838_v7 }
 0x215   : > { %v1042_v25 = vmax.f32 %v1040_v29, %v1041_v37  ;;  %v789_v51 = vmax.f32 %v787_v17, %v788_v8  ;;  %v1005_v59 = vrot.slane %v1004_v40, 2  ;;  %v1047_v46 = vmax.f32 %v1045_v3, %v1046_v44 }
 0x216   : > { %v652_v18 = vpack.c.b16 %v651_v43, %v651_v43  ;;  %v841_v10 = vpack.c.bf16 %v809_v21, %v809_v21  ;;  %v842_v13 = vpack.c.bf16 %v818_v60, %v818_v60  ;;  %v843_v16 = vpack.c.bf16 %v827_v5, %v827_v5 }
 0x217   : > { %v1043_v54 = vrot.slane %v1042_v25, 1  ;;  %v790_v20 = vrot.slane %v789_v51, 1  ;;  %v1006_v55 = vmax.f32 %v1004_v40, %v1005_v59  ;;  %v1048_v58 = vrot.slane %v1047_v46, 4 }
 0x218   : > { %1227 = vmatmul.msk.bf16.vlgmr.msrb.gmra.mxu1 %vm540_vm6, %v652_v18  ;;  %v1071_v4 = vunpack.c.l.b16 %v1055_v26  ;;  %v1058_v11 = vpack.c.bf16 %v1026_v39, %v1026_v39  ;;  %v1059_v27 = vpack.c.bf16 %v1035_v36, %v1035_v36  ;;  %v861_v3 = vsel %vm638_vm12, %v854_v14, %v1711_v52 }
 0x219   : > { %v791_v62 = vmax.f32 %v789_v51, %v790_v20  ;;  %v1007_v9 = vrot.slane %v1006_v55, 1  ;;  %v1049_v47 = vmax.f32 %v1047_v46, %v1048_v58  ;;  %v1044_v42 = vmax.f32 %v1042_v25, %v1043_v54  ;;  %v428_v46 = vld [vmem:[%s1880_s2 + $0x4] sm:$0xf]  ;;  %v1297_v58 = vld [vmem:[%s1881_s3] ss:$0 sm:$0xff] }
 0x21a   : > { %v857_v30 = vunpack.c.l.b16 %v841_v10  ;;  %v844_v1 = vpack.c.bf16 %v836_v2, %v836_v2  ;;  %v858_v28 = vunpack.c.l.b16 %v842_v13  ;;  %v859_v49 = vunpack.c.l.b16 %v843_v16 }
 0x21b   : > { %v839_v12 = vpack.c.bf16 %v791_v62, %v791_v62  ;;  %v1008_v23 = vmax.f32 %v1006_v55, %v1007_v9  ;;  %v1050_v24 = vrot.slane %v1049_v47, 2  ;;  %v1060_v22 = vpack.c.bf16 %v1044_v42, %v1044_v42 }
 0x21c   : > { %v1078_v48 = vsel %vm638_vm12, %v1071_v4, %v1715_v50  ;;  %v1074_v15 = vunpack.c.l.b16 %v1058_v11  ;;  %v1075_v33 = vunpack.c.l.b16 %v1059_v27  ;;  %v860_v34 = vunpack.c.l.b16 %v844_v1 }
 0x21d   : > { %v855_v0 = vunpack.c.l.b16 %v839_v12  ;;  %v1056_v38 = vpack.c.bf16 %v1008_v23, %v1008_v23  ;;  %v1051_v6 = vmax.f32 %v1049_v47, %v1050_v24  ;;  %v1076_v40 = vunpack.c.l.b16 %v1060_v22 }
 0x21e   : > { %v875_v7 = vsel %vm656_vm11, %v428_v46, 0 }
 0x21f   : > { %v862_v41 = vsel %vm640_vm13, %v855_v0, %v861_v3  ;;  %v1072_v29 = vunpack.c.l.b16 %v1056_v38  ;;  %v1052_v17 = vrot.slane %v1051_v6, 1  ;;  %884 = vmatpush.bf16.msrb.mxu2 %v875_v7 }
 0x220   : > { %v863_v61 = vsel %vm642_vm14, %v1721_v57, %v862_v41 }
 0x221   : > { %v1053_v45 = vmax.f32 %v1051_v6, %v1052_v17  ;;  %v864_v56 = vsel %vm644_vm15, %v857_v30, %v863_v61  ;;  %v1079_v52 = vsel %vm640_vm13, %v1072_v29, %v1078_v48 }
 0x222   : > { %v865_v37 = vsel %vm646_vm0, %v858_v28, %v864_v56  ;;  %v1080_v8 = vsel %vm642_vm14, %v1073_v32, %v1079_v52 }
 0x223   : > { %v866_v63 = vsel %vm648_vm1, %v859_v49, %v865_v37  ;;  %v1061_v31 = vpack.c.bf16 %v1053_v45, %v1053_v45  ;;  %v1081_v57 = vsel %vm644_vm15, %v1074_v15, %v1080_v8 }
 0x224   : > { %v867_v50 = vsel %vm650_vm2, %v860_v34, %v866_v63  ;;  %v1082_v35 = vsel %vm646_vm0, %v1075_v33, %v1081_v57 }
 0x225   : > { %v868_v44 = vpack.c.b16 %v867_v50, %v867_v50  ;;  %v1077_v19 = vunpack.c.l.b16 %v1061_v31  ;;  %v1083_v25 = vsel %vm648_vm1, %v1076_v40, %v1082_v35 }
 0x227   : > { %869 = vrot.lane.b32.xlu1 %v868_v44, %s1364_s14  ;;  %v1084_v51 = vsel %vm650_vm2, %v1077_v19, %v1083_v25  ;;  %s1120_s14 = scalar_lea.hbm %s1882_s4, %s1231_s9 }
 0x228   : > { %v1085_v59 = vpack.c.b16 %v1084_v51, %v1084_v51  ;;  %s1124_s23 = sshll.u32 %s1120_s14, 4  ;;  %s1125_s23 = int_to_ptr.hbm [resolvable:$true] %s1124_s23 }
 0x229   : > { %s1312_s27 = sshra.s32 %s1125_s23, 4  ;;  %s1313_s27 = int_to_ptr.hbm [resolvable:$true] %s1312_s27 }
 0x22a   : > { %1086 = vrot.lane.b32.xlu2 %v1085_v59, %s1367_s30  ;;  %s1314_s28 = scalar_lea.hbm %s1313_s27, 8  ;;  %p1319_p0 = scmp.lt.s32.totalorder %s1313_s27, %s1882_s4 }
 0x22b   : > { %p1315_p11 = scmp.ne.s32.totalorder %s1313_s27, %s1314_s28  ;;  %p1320_p1 = scmp.lt.s32.totalorder %s1318_s5, %s1314_s28 }
 0x22d   : > { %p1316_p12 = pnand %p1315_p11, %p1431_p5  ;;  %p1321_p2 = por %p1320_p1, %p1319_p0 }
 0x22f   : > { %p1317_p13 = pneg %p1316_p12 }
 0x231   : > { %p1322_p3 = pnand %p1321_p2, %p1317_p13 }
 0x284   : > { %v1087_v21 = vpop.permute.xlu2 %1086 }
 0x285   : > { %1229 = vmatmul.msk.bf16.vlgmr.msrb.gmra.mxu3 %vm540_vm6, %v1087_v21 }
 0x295   : > { %v669_v53 = vpop.f32.mrf.mxu1 }
 0x296   : > { %v673_v60 = vadd.f32 %v1297_v58, %v669_v53 }
 0x299   : > { %v870_v43 = vpop.permute.xlu1 %869 }
 0x29a   : > { %1228 = vmatmul.msk.bf16.vlgmr.msrb.gmra.mxu2 %vm540_vm6, %v870_v43 }
 0x29d   : > { %v671_v54 = vpop.f32.mrf.mxu1 }
 0x308   : > { %v1103_v20 = vpop.f32.mrf.mxu3 }
 0x310   : > { %v1105_v55 = vpop.f32.mrf.mxu3 }
 0x31d   : > { %v886_v5 = vpop.f32.mrf.mxu2 }
 0x31e   : > { %v890_v26 = vadd.f32 %v886_v5, %v673_v60 }
 0x320   : > { %v1107_v18 = vadd.f32 %v1103_v20, %v890_v26 }
 0x322   : > { %1108 = vst [vmem:[%s191_s20] sm:$0xff] %v1107_v18 }
 0x323   : > { %1325 = shalt.err (!%p1322_p3)
}
 0x324   : > { %1249 = dma.vmem_to_hbm [thread:$0]  (%p1431_p5), %s1123_s22, 128, %s1125_s23, %s1110_s19  }
 0x325   : > { %v888_v39 = vpop.f32.mrf.mxu2 }
 0x326 PF: > { %p1255_p4 = scmp.ge.s32.totalorder %s1360_s18, 2  ;;  %s1136_s7 = sand.u32 1, %s1348_s15  }
 0x327   : > { %s1137_s9 = scalar_lea.sflag [#allocation3], %s1136_s7 }
 0x328   : > { %p1252_p7 = pnand %p1255_p4, %p1435_p6 }
 0x32a   : > { %p1253_p8 = pneg %p1252_p7 }
 0x32c   : > { %1343 = dma.done.wait (%p1253_p8), %s1137_s9, 128  }
 0x32d   : > { %1345 = vsyncadd (%p1253_p8), %s1137_s9, 4294967168  ;;  %p14_p9 = scmp.ge.s32.totalorder %s1418_s21, 4   ;;  %s1885_s15 = smov %s1352_s16 }
 0x32e   : > { %s1886_s16 = smov %s1356_s17  ;;  %s1887_s17 = smov %s1429_s24 }
 0x32f   : > { %s1888_s18 = smov %s1418_s21  ;;  %16 = sbr.rel (!%p14_p9) target bundleno = 3 (0x3), region = 71 }
 0x334   :  { %1143 = vsyncpa [#allocation3], 1 }
 0x335   :  { %1145 = vsyncpa [#allocation3 + $0x1], 1 }

</bundles_post_ra>
